<compile_context>
chip_gen: v6e
topology: v6e:2x2x1
jax: 0.10.0
libtpu: 0.0.40
codegen_flags: <defaults>
</compile_context>

<pallas_src>
import functools
import math

import jax
import jax.numpy as jnp
from jax.experimental import pallas as pl
from jax.experimental.pallas import tpu as pltpu

_INV_SQRT2 = 1.0 / math.sqrt(2.0)


def _intermediate_kernel(x_ref, w_ref, b_ref, o_ref, acc_ref, *, use_bf16):
    # x_ref: (tm, tk); w_ref: (tn, tk) tile of torch-style (out, in) weight
    # b_ref: (1, tn); o_ref: (tm, tn); acc_ref: (tm, tn) f32 scratch
    k = pl.program_id(2)

    @pl.when(k == 0)
    def _():
        acc_ref[...] = jnp.zeros_like(acc_ref)

    x = x_ref[...]
    w = w_ref[...]
    if use_bf16:
        x = x.astype(jnp.bfloat16)
        w = w.astype(jnp.bfloat16)

    # Contract on the weight's last (input) axis -> x @ W^T without a host transpose.
    acc_ref[...] += jax.lax.dot_general(
        x, w,
        dimension_numbers=(((1,), (1,)), ((), ())),
        preferred_element_type=jnp.float32)

    @pl.when(k == pl.num_programs(2) - 1)
    def _():
        y = acc_ref[...] + b_ref[...].astype(jnp.float32)
        # exact (erf) GELU — matches torch.nn.functional.gelu default
        y = 0.5 * y * (1.0 + jax.lax.erf(y * _INV_SQRT2))
        o_ref[...] = y.astype(o_ref.dtype)


def _round_up(x, m):
    return ((x + m - 1) // m) * m


def intermediate_forward(hidden_states, weight, bias, *,
                         tm=512, tn=512, tk=512, use_bf16=False):
    """y = gelu(hidden_states @ weight.T + bias).

    hidden_states: (B, S, H); weight: (H, H) torch layout (out, in); bias: (H,)
    """
    B, S, H = hidden_states.shape
    M = B * S
    dtype = hidden_states.dtype
    itemsize = jnp.dtype(dtype).itemsize

    # ---- row (M) tiling: pad row count to a multiple of the row tile ----
    row_align = 16 if itemsize == 2 else 8
    tm_eff = _round_up(min(tm, _round_up(M, row_align)), row_align)
    M_pad = _round_up(M, tm_eff)

    # ---- N / K tiling over the hidden dim (fall back to full H if not divisible) ----
    tn_eff = tn if (H % tn == 0) else H
    tk_eff = tk if (H % tk == 0) else H

    x2d = hidden_states.reshape(M, H)
    if M_pad != M:
        x2d = jnp.pad(x2d, ((0, M_pad - M), (0, 0)))
    b2d = bias.reshape(1, H)

    grid = (M_pad // tm_eff, H // tn_eff, H // tk_eff)

    # Advisory cost estimate so XLA schedules surrounding ops to overlap.
    cost = pl.CostEstimate(
        flops=2 * M_pad * H * H,
        transcendentals=M_pad * H,
        bytes_accessed=(M_pad * H + H * H + H + M_pad * H) * itemsize,
    )

    # Scoped VMEM sized to the real working set (double-buffered blocks + f32 acc).
    work_bytes = (2 * (tm_eff * tk_eff + tn_eff * tk_eff + tn_eff + tm_eff * tn_eff)
                  * itemsize + tm_eff * tn_eff * 4)
    vmem_limit = min(max(2 * work_bytes + (4 << 20), 32 << 20), 64 << 20)

    kernel = functools.partial(_intermediate_kernel, use_bf16=use_bf16)

    out2d = pl.pallas_call(
        kernel,
        out_shape=jax.ShapeDtypeStruct((M_pad, H), dtype),
        grid_spec=pltpu.PrefetchScalarGridSpec(
            num_scalar_prefetch=0,
            grid=grid,
            in_specs=[
                pl.BlockSpec((tm_eff, tk_eff), lambda i, j, k: (i, k)),  # x row/K tile
                pl.BlockSpec((tn_eff, tk_eff), lambda i, j, k: (j, k)),  # weight (out,in) tile
                pl.BlockSpec((1, tn_eff), lambda i, j, k: (0, j)),       # bias N tile
            ],
            out_specs=pl.BlockSpec((tm_eff, tn_eff), lambda i, j, k: (i, j)),
            scratch_shapes=[pltpu.VMEM((tm_eff, tn_eff), jnp.float32)],
        ),
        compiler_params=pltpu.CompilerParams(
            dimension_semantics=("parallel", "parallel", "arbitrary"),
            vmem_limit_bytes=vmem_limit,
        ),
        cost_estimate=cost,
    )(x2d, weight, b2d)

    if M_pad != M:
        out2d = out2d[:M]
    return out2d.reshape(B, S, H)


def _reference(hidden_states, weight, bias):
    y = jnp.einsum("bsh,oh->bso", hidden_states, weight) + bias
    return 0.5 * y * (1.0 + jax.lax.erf(y * _INV_SQRT2))


if __name__ == "__main__":
    key = jax.random.PRNGKey(0)

    # --- case 1: the module's toy config (hidden_size=32) ---
    B, S, H = 2, 8, 32
    k_x, k_w, k_b, key = jax.random.split(key, 4)
    x = jax.random.normal(k_x, (B, S, H), dtype=jnp.float32)
    weight = jax.random.normal(k_w, (H, H), dtype=jnp.float32) * (1.0 / math.sqrt(H))
    bias = jax.random.normal(k_b, (H,), dtype=jnp.float32) * 0.01

    out = jax.block_until_ready(intermediate_forward(x, weight, bias))
    ref = _reference(x, weight, bias)
    assert out.shape == (B, S, H)
    assert jnp.allclose(out, ref, atol=1e-4, rtol=1e-4), "mismatch vs reference (case 1)"

    # --- case 2: exercises row padding, N/K tiling, and the K-accumulator path ---
    B2, S2, H2 = 2, 40, 256          # M=80 -> padded to 128 with tm=64
    k_x2, k_w2, k_b2, key = jax.random.split(key, 4)
    x2 = jax.random.normal(k_x2, (B2, S2, H2), dtype=jnp.float32)
    weight2 = jax.random.normal(k_w2, (H2, H2), dtype=jnp.float32) * (1.0 / math.sqrt(H2))
    bias2 = jax.random.normal(k_b2, (H2,), dtype=jnp.float32) * 0.01

    out2 = jax.block_until_ready(
        intermediate_forward(x2, weight2, bias2, tm=64, tn=128, tk=128))
    ref2 = _reference(x2, weight2, bias2)
    assert out2.shape == (B2, S2, H2)
    assert jnp.allclose(out2, ref2, atol=1e-4, rtol=1e-4), "mismatch vs reference (case 2)"

    print("KERNEL_OK")
</pallas_src>

<mosaic_0001>
module attributes {stable_mosaic.version = 11 : i64} {
  func.func @_intermediate_kernel(%arg0: i32, %arg1: i32, %arg2: i32, %arg3: memref<16x32xf32, #tpu.memory_space<vmem>>, %arg4: memref<32x32xf32, #tpu.memory_space<vmem>>, %arg5: memref<1x32xf32, #tpu.memory_space<vmem>>, %arg6: memref<16x32xf32, #tpu.memory_space<vmem>>, %arg7: memref<16x32xf32, #tpu.memory_space<vmem>>) attributes {dimension_semantics = [#tpu.dimension_semantics<parallel>, #tpu.dimension_semantics<parallel>, #tpu.dimension_semantics<arbitrary>], iteration_bounds = array<i64: 1, 1, 1>, scalar_prefetch = 0 : i64, scratch_operands = 1 : i64, tpu.core_type = #tpu.core_type<tc>, window_params = [{transform_indices = @transform_0, window_bounds = array<i64: 16, 32>}, {transform_indices = @transform_1, window_bounds = array<i64: 32, 32>}, {transform_indices = @transform_2, window_bounds = array<i64: 1, 32>}, {transform_indices = @transform_3, window_bounds = array<i64: 16, 32>}]} {
    %c0_i32 = arith.constant 0 : i32
    %0 = arith.cmpi eq, %arg2, %c0_i32 : i32
    %1 = arith.extui %0 : i1 to i32
    %c0_i32_0 = arith.constant 0 : i32
    %2 = arith.cmpi ne, %1, %c0_i32_0 : i32
    scf.if %2 {
      %cst_10 = arith.constant 0.000000e+00 : f32
      %12 = vector.broadcast %cst_10 : f32 to vector<16x32xf32>
      %c0_11 = arith.constant 0 : index
      %c0_12 = arith.constant 0 : index
      %13 = vector.load %arg7[%c0_11, %c0_12] : memref<16x32xf32, #tpu.memory_space<vmem>>, vector<16x32xf32>
      tpu.vector_store %arg7[%c0_11, %c0_12], %12 {strides = array<i32>} : memref<16x32xf32, #tpu.memory_space<vmem>>, vector<16x32xf32>,
    } else {
    }
    %c0 = arith.constant 0 : index
    %c0_1 = arith.constant 0 : index
    %3 = vector.load %arg3[%c0, %c0_1] : memref<16x32xf32, #tpu.memory_space<vmem>>, vector<16x32xf32>
    %c0_2 = arith.constant 0 : index
    %c0_3 = arith.constant 0 : index
    %4 = vector.load %arg4[%c0_2, %c0_3] : memref<32x32xf32, #tpu.memory_space<vmem>>, vector<32x32xf32>
    %c0_4 = arith.constant 0 : index
    %c0_5 = arith.constant 0 : index
    %5 = vector.load %arg7[%c0_4, %c0_5] : memref<16x32xf32, #tpu.memory_space<vmem>>, vector<16x32xf32>
    %cst = arith.constant dense<0.000000e+00> : vector<16x32xf32>
    %6 = tpu.matmul %3, %4, %cst {dimension_numbers = #tpu.dot_dimension_numbers<[1], [1], [0], [0], [0, 0, 1, 0], [], []>} : vector<16x32xf32>, vector<32x32xf32>, vector<16x32xf32> -> vector<16x32xf32>
    %7 = arith.addf %5, %6 : vector<16x32xf32>
    %c0_6 = arith.constant 0 : index
    %c0_7 = arith.constant 0 : index
    %8 = vector.load %arg7[%c0_6, %c0_7] : memref<16x32xf32, #tpu.memory_space<vmem>>, vector<16x32xf32>
    tpu.vector_store %arg7[%c0_6, %c0_7], %7 {strides = array<i32>} : memref<16x32xf32, #tpu.memory_space<vmem>>, vector<16x32xf32>,
    %c0_i32_8 = arith.constant 0 : i32
    %9 = arith.cmpi eq, %arg2, %c0_i32_8 : i32
    %10 = arith.extui %9 : i1 to i32
    %c0_i32_9 = arith.constant 0 : i32
    %11 = arith.cmpi ne, %10, %c0_i32_9 : i32
    scf.if %11 {
      %c0_10 = arith.constant 0 : index
      %c0_11 = arith.constant 0 : index
      %12 = vector.load %arg7[%c0_10, %c0_11] : memref<16x32xf32, #tpu.memory_space<vmem>>, vector<16x32xf32>
      %c0_12 = arith.constant 0 : index
      %c0_13 = arith.constant 0 : index
      %13 = vector.load %arg5[%c0_12, %c0_13] : memref<1x32xf32, #tpu.memory_space<vmem>>, vector<1x32xf32>
      %14 = vector.broadcast %13 : vector<1x32xf32> to vector<16x32xf32>
      %15 = arith.addf %12, %14 : vector<16x32xf32>
      %cst_14 = arith.constant 5.000000e-01 : f32
      %16 = vector.broadcast %cst_14 : f32 to vector<16x32xf32>
      %17 = arith.mulf %16, %15 : vector<16x32xf32>
      %cst_15 = arith.constant 0.707106769 : f32
      %18 = vector.broadcast %cst_15 : f32 to vector<16x32xf32>
      %19 = arith.mulf %15, %18 : vector<16x32xf32>
      %20 = math.erf %19 : vector<16x32xf32>
      %cst_16 = arith.constant 1.000000e+00 : f32
      %21 = vector.broadcast %cst_16 : f32 to vector<16x32xf32>
      %22 = arith.addf %21, %20 : vector<16x32xf32>
      %23 = arith.mulf %17, %22 : vector<16x32xf32>
      %c0_17 = arith.constant 0 : index
      %c0_18 = arith.constant 0 : index
      %24 = vector.load %arg6[%c0_17, %c0_18] : memref<16x32xf32, #tpu.memory_space<vmem>>, vector<16x32xf32>
      tpu.vector_store %arg6[%c0_17, %c0_18], %23 {strides = array<i32>} : memref<16x32xf32, #tpu.memory_space<vmem>>, vector<16x32xf32>,
    } else {
    }
    return
  }
  func.func @transform_0(%arg0: i32, %arg1: i32, %arg2: i32) -> (i32, i32) {
    %c0_i32 = arith.constant 0 : i32
    return %arg0, %arg2 : i32, i32
  }
  func.func @transform_1(%arg0: i32, %arg1: i32, %arg2: i32) -> (i32, i32) {
    %c0_i32 = arith.constant 0 : i32
    return %arg1, %arg2 : i32, i32
  }
  func.func @transform_2(%arg0: i32, %arg1: i32, %arg2: i32) -> (i32, i32) {
    %c0_i32 = arith.constant 0 : i32
    %c0_i32_0 = arith.constant 0 : i32
    return %c0_i32, %arg1 : i32, i32
  }
  func.func @transform_3(%arg0: i32, %arg1: i32, %arg2: i32) -> (i32, i32) {
    %c0_i32 = arith.constant 0 : i32
    return %arg0, %arg1 : i32, i32
  }
}

</mosaic_0001>

<bundles_post_ra>
// kernel: tpu_custom_call.1
= control target key start
LH: loop header
LB: loop body
LE: loop exit
PB: predicated region body
PF: predicated region fallthrough
CT: control target
= control target key end

     0   :  { %8 = vsyncpa [#allocation4], 0  ;;  %s363_s0 = inlined_call_operand.hbm [shape: f32[16,32], index: 0, kind: input, shape index: {}]   ;;  %s364_s1 = inlined_call_operand.hbm [shape: f32[32,32], index: 1, kind: input, shape index: {}]   ;;  %s365_s2 = inlined_call_operand.vmem [shape: f32[1,32], index: 2, kind: input, shape index: {}]   ;;  %s366_s3 = inlined_call_operand.hbm [shape: f32[16,32], index: 3, kind: output, shape index: {}]  }
   0x1   :  { %9 = vsyncpa [#allocation7], 0 }
   0x2   :  { %10 = vsyncpa [#allocation5], 0  ;;  %s300_s12 = smov [#allocation3]  }
   0x3   :  { %s16_s13 = sshll.u32 %s300_s12, 4  ;;  %s17_s13 = int_to_ptr.vmem [resolvable:$true] %s16_s13 }
   0x4   :  { %s242_s14 = scalar_lea.vmem %s17_s13, 256  ;;  %p247_p1 = scmp.lt.s32.totalorder %s17_s13, %s17_s13 }
   0x5   :  { %p243_p0 = scmp.ne.s32.totalorder %s17_s13, %s242_s14  ;;  %p248_p2 = scmp.lt.s32.totalorder %s242_s14, %s242_s14 }
   0x7   :  { %p249_p3 = por %p248_p2, %p247_p1 }
   0x9   :  { %p250_p4 = pnand %p249_p3, %p243_p0 }
   0xb   :  { %253 = shalt.err (!%p250_p4)
}
   0xc   :  { %s301_s15 = smov 128   ;;  %s302_s16 = smov 8  }
   0xd   :  { %22 = dma.hbm_to_vmem [thread:$0]  %s363_s0, 256, %s17_s13, [#allocation4], %s301_s15, %s301_s15, %s302_s16  }
   0xe   :  { %s303_s19 = smov [#allocation6]  }
   0xf   :  { %s28_s20 = sshll.u32 %s303_s19, 4  ;;  %s29_s20 = int_to_ptr.vmem [resolvable:$true] %s28_s20 }
  0x10   :  { %s262_s21 = scalar_lea.vmem %s29_s20, 512  ;;  %p267_p6 = scmp.lt.s32.totalorder %s29_s20, %s29_s20 }
  0x11   :  { %p263_p5 = scmp.ne.s32.totalorder %s29_s20, %s262_s21  ;;  %p268_p7 = scmp.lt.s32.totalorder %s262_s21, %s262_s21 }
  0x13   :  { %p269_p8 = por %p268_p7, %p267_p6 }
  0x15   :  { %p270_p9 = pnand %p269_p8, %p263_p5 }
  0x17   :  { %273 = shalt.err (!%p270_p9)
}
  0x18   :  { %34 = dma.hbm_to_vmem [thread:$0]  %s364_s1, 512, %s29_s20, [#allocation7], %s301_s15, %s301_s15, %s302_s16  }
  0x19   :  { %294 = dma.done.wait [#allocation4], 256  }
  0x1a   :  { %295 = vsyncadd [#allocation4], 4294967040 }
  0x1b   :  { %296 = dma.done.wait [#allocation7], 512  }
  0x1c   :  { %297 = vsyncadd [#allocation7], 4294966784  ;;  %vm47_vm0 = vcmask 261120   ;;  %v304_v0 = vmov 0.0   ;;  %v55_v1 = vld [vmem:[#allocation6 + $0x18] sm:$0xff]  ;;  %v54_v2 = vld [vmem:[#allocation6 + $0x10] sm:$0xff] }
  0x1d   :  { %49 = vst.msk [vmem:[#allocation2 + $0x8] sm:$0xff] %vm47_vm0, %v304_v0  ;;  %48 = vst.msk [vmem:[#allocation2] sm:$0xff] %vm47_vm0, %v304_v0  ;;  %213 = vmatprep.subr.msk.mxu0 %vm47_vm0, %v55_v1  ;;  %v50_v3 = vld [vmem:[#allocation3] sm:$0xff]  ;;  %v53_v4 = vld [vmem:[#allocation6 + $0x8] sm:$0xff]  ;;  %s305_s24 = smov [#allocation8]  }
  0x1e   :  { %214 = vmatpush3.xpose.msk.msra.mxu0 %vm47_vm0, %v55_v1  ;;  %221 = vmatprep.mubr.msk.f32.mxu0 %vm47_vm0, %v50_v3  ;;  %v52_v5 = vld [vmem:[#allocation6] sm:$0xff]  ;;  %v51_v6 = vld [vmem:[#allocation3 + $0x8] sm:$0xff]  ;;  %s187_s25 = sshll.u32 %s305_s24, 4  ;;  %s188_s25 = int_to_ptr.vmem [resolvable:$true] %s187_s25 }
  0x1f   :  { %215 = vmatprep.subr.msk.mxu0 %vm47_vm0, %v54_v2  ;;  %v206_v13 = vld [vmem:[%s365_s2] ss:$0 sm:$0xff]  ;;  %s274_s2 = scalar_lea.vmem %s188_s25, 256  ;;  %p279_p11 = scmp.lt.s32.totalorder %s188_s25, %s188_s25 }
  0x20   :  { %p275_p10 = scmp.ne.s32.totalorder %s188_s25, %s274_s2  ;;  %p280_p12 = scmp.lt.s32.totalorder %s274_s2, %s274_s2 }
  0x22   :  { %216 = vmatpush3.xpose.msk.msra.mxu0 %vm47_vm0, %v54_v2  ;;  %p281_p13 = por %p280_p12, %p279_p11 }
  0x23   :  { %217 = vmatprep.subr.msk.mxu0 %vm47_vm0, %v53_v4 }
  0x24   :  { %v57_v7 = vld [vmem:[#allocation2 + $0x8] sm:$0xff]  ;;  %v56_v9 = vld [vmem:[#allocation2] sm:$0xff]  ;;  %p282_p0 = pnand %p281_p13, %p275_p10 }
  0x26   :  { %218 = vmatpush3.xpose.msk.msra.mxu0 %vm47_vm0, %v53_v4 }
  0x27   :  { %219 = vmatprep.subr.msk.mxu0 %vm47_vm0, %v52_v5 }
  0x2a   :  { %220 = vmatpush3.xpose.msk.msra.mxu0 %vm47_vm0, %v52_v5 }
  0x2d   :  { %222 = vmatmul.mubr.msk.f32.vlgmr.msra.gmra.mxu0 %vm47_vm0, %v51_v6 }
  0xed   :  { %v223_v8 = vpop.f32.mrf.mxu0 }
  0xee   :  { %v153_v10 = vadd.f32 %v223_v8, %v57_v7 }
  0xef   :  { %v143_v11 = vpop.f32.mrf.mxu0 }
  0xf0   :  { %155 = vst.msk [vmem:[#allocation2 + $0x8] sm:$0xff] %vm47_vm0, %v153_v10  ;;  %v152_v12 = vadd.f32 %v143_v11, %v56_v9 }
  0xf2   :  { %154 = vst.msk [vmem:[#allocation2] sm:$0xff] %vm47_vm0, %v152_v12 }
  0xf7   :  { %v160_v14 = vld [vmem:[#allocation2 + $0x8] sm:$0xff] }
  0xf8   :  { %v169_v15 = vadd.f32 %v206_v13, %v160_v14 }
  0xf9   :  { %v159_v16 = vld [vmem:[#allocation2] sm:$0xff] }
  0xfa   :  { %v168_v17 = vadd.f32 %v206_v13, %v159_v16  ;;  %v173_v18 = vmul.f32 0.70710677, %v169_v15  ;;  %v171_v21 = vmul.f32 0.5, %v169_v15 }
  0xfc   :  { %v172_v19 = vmul.f32 0.70710677, %v168_v17  ;;  %230 = verf.f32 %v173_v18  ;;  %v170_v24 = vmul.f32 0.5, %v168_v17 }
  0xfe   :  { %232 = verf.f32 %v172_v19 }
 0x109   :  { %v231_v20 = vpop.eup %230 }
 0x10a   :  { %v177_v22 = vadd.f32 1.0, %v231_v20 }
 0x10b   :  { %v233_v23 = vpop.eup %232 }
 0x10c   :  { %v176_v25 = vadd.f32 1.0, %v233_v23  ;;  %v179_v26 = vmul.f32 %v177_v22, %v171_v21 }
 0x10e   :  { %v178_v27 = vmul.f32 %v176_v25, %v170_v24  ;;  %181 = vst.msk [vmem:[#allocation8 + $0x8] sm:$0xff] %vm47_vm0, %v179_v26 }
 0x110   :  { %180 = vst.msk [vmem:[#allocation8] sm:$0xff] %vm47_vm0, %v178_v27 }
 0x111   :  { %285 = shalt.err (!%p282_p0)
}
 0x112   :  { %193 = dma.vmem_to_hbm [thread:$0]  %s188_s25, 256, %s366_s3, [#allocation5], %s301_s15, %s301_s15, %s302_s16  }
 0x113   :  { %298 = dma.done.wait [#allocation5], 256  }
 0x114   :  { %299 = vsyncadd [#allocation5], 4294967040 }
 0x115   :  { %197 = vsyncpa [#allocation4], 1 }
 0x116   :  { %198 = vsyncpa [#allocation7], 1 }
 0x117   :  { %199 = vsyncpa [#allocation5], 1 }

</bundles_post_ra>
